<compile_context>
chip_gen: v7x
topology: tpu7x:2x2x1
jax: 0.10.0
libtpu: 0.0.40
codegen_flags: <defaults>
</compile_context>

<pallas_src>
import jax
import jax.numpy as jnp
from jax.experimental import pallas as pl
from jax.experimental.pallas import tpu as pltpu


def _apply_attention_kernel(states_ref, scores_ref, mask_ref, ctx_ref, w_ref):
    # states_ref: (TB, T, H)   scores_ref/mask_ref: (TB, T)
    # ctx_ref:    (TB, H)      w_ref:               (TB, T)
    scores = scores_ref[...]
    mask = mask_ref[...]

    # Masking: invalid positions -> -1000.0 (exact PyTorch semantics).
    s = jnp.where(mask > 0.5, scores, jnp.float32(-1000.0))

    # Numerically-stable softmax over T (last/lane axis).
    m = jnp.max(s, axis=1, keepdims=True)
    e = jnp.exp(s - m)
    denom = jnp.sum(e, axis=1, keepdims=True)
    w = e / denom                                          # (TB, T)
    w_ref[...] = w.astype(w_ref.dtype)

    # Weighted sum over T: (TB, T, H) * (TB, T, 1) -> sum over axis 1.
    states = states_ref[...]
    ctx = jnp.sum(states * w[:, :, None].astype(states.dtype), axis=1)
    ctx_ref[...] = ctx.astype(ctx_ref.dtype)


def _choose_block_b(B: int, T: int, H: int, budget_bytes: int = 8 * 1024 * 1024) -> int:
    """Largest batch-tile whose double-buffered f32 footprint fits the budget.

    Budget (~8 MiB) is sized to leave headroom under the smallest default
    scoped-VMEM (16 MiB on v5e) and v7x's 64 MiB physical VMEM.
    """
    per_row = 4 * (T * H + 3 * T + H)        # states + scores + mask + weights + ctx
    tb = max(1, budget_bytes // (2 * per_row))   # x2 for double buffering
    tb = min(B, tb)
    if tb < B:
        # keep the sublane dim of the 2D tiles a multiple of 8
        tb = max(8, (tb // 8) * 8)
        tb = min(tb, B)
    return tb


def apply_attention(states: jnp.ndarray,
                    attention_scores: jnp.ndarray,
                    mask: jnp.ndarray | None = None):
    """states: (B, T, H) f32, attention_scores: (B, T, 1) f32, mask: (B, T) bool or None.

    Returns (final_context (B, H), weights (B, T, 1)) matching the PyTorch module.
    """
    B, T, H = states.shape
    scores_2d = attention_scores.reshape(B, T).astype(jnp.float32)
    if mask is None:
        mask_f = jnp.ones((B, T), dtype=jnp.float32)
    else:
        mask_f = mask.astype(jnp.float32)

    tb = _choose_block_b(B, T, H)
    grid = (pl.cdiv(B, tb),)

    ctx, weights = pl.pallas_call(
        _apply_attention_kernel,
        out_shape=(
            jax.ShapeDtypeStruct((B, H), states.dtype),
            jax.ShapeDtypeStruct((B, T), jnp.float32),
        ),
        grid=grid,
        in_specs=[
            pl.BlockSpec((tb, T, H), lambda i: (i, 0, 0)),
            pl.BlockSpec((tb, T), lambda i: (i, 0)),
            pl.BlockSpec((tb, T), lambda i: (i, 0)),
        ],
        out_specs=[
            pl.BlockSpec((tb, H), lambda i: (i, 0)),
            pl.BlockSpec((tb, T), lambda i: (i, 0)),
        ],
        compiler_params=pltpu.CompilerParams(
            dimension_semantics=("parallel",),          # megacore sharding on v7x
            vmem_limit_bytes=32 * 1024 * 1024,
        ),
    )(states, scores_2d, mask_f)

    return ctx, weights.reshape(B, T, 1)


if __name__ == "__main__":
    # Small, module-consistent shapes: batch=2, T=8 timesteps, hidden=32.
    B, T, H = 2, 8, 32

    key = jax.random.PRNGKey(0)
    k1, k2 = jax.random.split(key)
    states = jax.random.normal(k1, (B, T, H), dtype=jnp.float32)
    scores = jax.random.normal(k2, (B, T, 1), dtype=jnp.float32)
    # Deterministic mask: first sequence has 5 valid items, second has 8.
    lengths = jnp.array([5, 8], dtype=jnp.int32)
    mask = jnp.arange(T)[None, :] < lengths[:, None]        # (B, T) bool

    ctx, weights = apply_attention(states, scores, mask)
    ctx = jax.block_until_ready(ctx)
    weights = jax.block_until_ready(weights)

    # Plain-JAX reference.
    s_masked = jnp.where(mask, scores[..., 0], jnp.float32(-1000.0))
    w_ref = jax.nn.softmax(s_masked, axis=1)                # (B, T)
    ctx_ref = jnp.sum(states * w_ref[:, :, None], axis=1)   # (B, H)

    assert ctx.shape == (B, H)
    assert weights.shape == (B, T, 1)
    assert jnp.allclose(weights[..., 0], w_ref, atol=1e-6, rtol=1e-6)
    assert jnp.allclose(ctx, ctx_ref, atol=1e-5, rtol=1e-5)

    # Also check the mask=None path (all items valid).
    ctx_nm, w_nm = apply_attention(states, scores, None)
    ctx_nm = jax.block_until_ready(ctx_nm)
    w_nm_ref = jax.nn.softmax(scores[..., 0], axis=1)
    assert jnp.allclose(w_nm[..., 0], w_nm_ref, atol=1e-6, rtol=1e-6)
    assert jnp.allclose(ctx_nm, jnp.sum(states * w_nm_ref[:, :, None], axis=1),
                        atol=1e-5, rtol=1e-5)

    print("KERNEL_OK")
</pallas_src>

<mosaic_0001>
module attributes {stable_mosaic.version = 11 : i64} {
  func.func @_apply_attention_kernel(%arg0: i32, %arg1: memref<2x8x32xf32, #tpu.memory_space<vmem>>, %arg2: memref<2x8xf32, #tpu.memory_space<vmem>>, %arg3: memref<2x8xf32, #tpu.memory_space<vmem>>, %arg4: memref<2x32xf32, #tpu.memory_space<vmem>>, %arg5: memref<2x8xf32, #tpu.memory_space<vmem>>) attributes {dimension_semantics = [#tpu.dimension_semantics<parallel>], iteration_bounds = array<i64: 1>, scalar_prefetch = 0 : i64, scratch_operands = 0 : i64, tpu.core_type = #tpu.core_type<tc>, window_params = [{transform_indices = @transform_0, window_bounds = array<i64: 2, 8, 32>}, {transform_indices = @transform_1, window_bounds = array<i64: 2, 8>}, {transform_indices = @transform_2, window_bounds = array<i64: 2, 8>}, {transform_indices = @transform_3, window_bounds = array<i64: 2, 32>}, {transform_indices = @transform_4, window_bounds = array<i64: 2, 8>}]} {
    %c0 = arith.constant 0 : index
    %c0_0 = arith.constant 0 : index
    %0 = vector.load %arg2[%c0, %c0_0] : memref<2x8xf32, #tpu.memory_space<vmem>>, vector<2x8xf32>
    %c0_1 = arith.constant 0 : index
    %c0_2 = arith.constant 0 : index
    %1 = vector.load %arg3[%c0_1, %c0_2] : memref<2x8xf32, #tpu.memory_space<vmem>>, vector<2x8xf32>
    %cst = arith.constant 5.000000e-01 : f32
    %2 = vector.broadcast %cst : f32 to vector<2x8xf32>
    %3 = arith.cmpf ogt, %1, %2 : vector<2x8xf32>
    %cst_3 = arith.constant -1.000000e+03 : f32
    %4 = vector.broadcast %cst_3 : f32 to vector<2x8xf32>
    %5 = arith.select %3, %0, %4 : vector<2x8xi1>, vector<2x8xf32>
    %cst_4 = arith.constant dense<0xFF800000> : vector<2xf32>
    %6 = vector.multi_reduction <maximumf>, %5, %cst_4 [1] : vector<2x8xf32> to vector<2xf32>
    %7 = vector.shape_cast %6 : vector<2xf32> to vector<2x1xf32>
    %8 = vector.broadcast %7 : vector<2x1xf32> to vector<2x8xf32>
    %9 = arith.subf %5, %8 : vector<2x8xf32>
    %10 = math.exp %9 : vector<2x8xf32>
    %cst_5 = arith.constant dense<0.000000e+00> : vector<2xf32>
    %11 = vector.multi_reduction <add>, %10, %cst_5 [1] : vector<2x8xf32> to vector<2xf32>
    %12 = vector.shape_cast %11 : vector<2xf32> to vector<2x1xf32>
    %13 = vector.broadcast %12 : vector<2x1xf32> to vector<2x8xf32>
    %14 = arith.divf %10, %13 : vector<2x8xf32>
    %c0_6 = arith.constant 0 : index
    %c0_7 = arith.constant 0 : index
    %15 = vector.load %arg5[%c0_6, %c0_7] : memref<2x8xf32, #tpu.memory_space<vmem>>, vector<2x8xf32>
    tpu.vector_store %arg5[%c0_6, %c0_7], %14 {strides = array<i32>} : memref<2x8xf32, #tpu.memory_space<vmem>>, vector<2x8xf32>,
    %c0_8 = arith.constant 0 : index
    %c0_9 = arith.constant 0 : index
    %c0_10 = arith.constant 0 : index
    %16 = vector.load %arg1[%c0_8, %c0_9, %c0_10] : memref<2x8x32xf32, #tpu.memory_space<vmem>>, vector<2x8x32xf32>
    %17 = vector.shape_cast %14 : vector<2x8xf32> to vector<2x8x1xf32>
    %18 = vector.broadcast %17 : vector<2x8x1xf32> to vector<2x8x32xf32>
    %19 = arith.mulf %16, %18 : vector<2x8x32xf32>
    %cst_11 = arith.constant dense<0.000000e+00> : vector<2x32xf32>
    %20 = vector.multi_reduction <add>, %19, %cst_11 [1] : vector<2x8x32xf32> to vector<2x32xf32>
    %c0_12 = arith.constant 0 : index
    %c0_13 = arith.constant 0 : index
    %21 = vector.load %arg4[%c0_12, %c0_13] : memref<2x32xf32, #tpu.memory_space<vmem>>, vector<2x32xf32>
    tpu.vector_store %arg4[%c0_12, %c0_13], %20 {strides = array<i32>} : memref<2x32xf32, #tpu.memory_space<vmem>>, vector<2x32xf32>,
    return
  }
  func.func @transform_0(%arg0: i32) -> (i32, i32, i32) {
    %c0_i32 = arith.constant 0 : i32
    %c0_i32_0 = arith.constant 0 : i32
    %c0_i32_1 = arith.constant 0 : i32
    return %arg0, %c0_i32, %c0_i32_0 : i32, i32, i32
  }
  func.func @transform_1(%arg0: i32) -> (i32, i32) {
    %c0_i32 = arith.constant 0 : i32
    %c0_i32_0 = arith.constant 0 : i32
    return %arg0, %c0_i32 : i32, i32
  }
  func.func @transform_2(%arg0: i32) -> (i32, i32) {
    %c0_i32 = arith.constant 0 : i32
    %c0_i32_0 = arith.constant 0 : i32
    return %arg0, %c0_i32 : i32, i32
  }
  func.func @transform_3(%arg0: i32) -> (i32, i32) {
    %c0_i32 = arith.constant 0 : i32
    %c0_i32_0 = arith.constant 0 : i32
    return %arg0, %c0_i32 : i32, i32
  }
  func.func @transform_4(%arg0: i32) -> (i32, i32) {
    %c0_i32 = arith.constant 0 : i32
    %c0_i32_0 = arith.constant 0 : i32
    return %arg0, %c0_i32 : i32, i32
  }
}

</mosaic_0001>

<bundles_post_ra>
// kernel: tpu_custom_call.1
= control target key start
LH: loop header
LB: loop body
LE: loop exit
PB: predicated region body
PF: predicated region fallthrough
CT: control target
= control target key end

     0   :  { %10 = vsyncpa [#allocation3], 0  ;;  %s274_s0 = inlined_call_operand.hbm [shape: f32[2,8,32], index: 0, kind: input, shape index: {}]   ;;  %s275_s1 = inlined_call_operand.vmem [shape: f32[2,8], index: 1, kind: input, shape index: {}]   ;;  %s276_s2 = inlined_call_operand.vmem [shape: f32[2,8], index: 2, kind: input, shape index: {}]   ;;  %s277_s3 = inlined_call_operand.hbm [shape: f32[2,32], index: 3, kind: output, shape index: {0}]   ;;  %s278_s4 = inlined_call_operand.hbm [shape: f32[2,8], index: 4, kind: output, shape index: {1}]  }
   0x1   :  { %11 = vsyncpa [#allocation4], 0 }
   0x2   :  { %12 = vsyncpa [#allocation7], 0  ;;  %s199_s15 = smov [#allocation2]   ;;  %s127_s19 = scalar_lea.hbm %s274_s0, 256 }
   0x3   :  { %s18_s16 = sshll.u32 %s199_s15, 4  ;;  %p128_p0 = scmp.ne.s32.totalorder %s274_s0, %s127_s19  ;;  %s19_s16 = int_to_ptr.vmem [resolvable:$true] %s18_s16 }
   0x4   :  { %p131_p1 = scmp.lt.u32.totalorder %s127_s19, %s274_s0 }
   0x6   :  { %p133_p2 = pnand %p131_p1, %p128_p0 }
   0x8   :  { %136 = shalt.err (!%p133_p2)
}
   0x9   :  { %s137_s24 = scalar_lea.vmem %s19_s16, 256  ;;  %p142_p4 = scmp.lt.s32.totalorder %s19_s16, %s19_s16 }
   0xa   :  { %p138_p3 = scmp.ne.s32.totalorder %s19_s16, %s137_s24  ;;  %p143_p5 = scmp.lt.s32.totalorder %s137_s24, %s137_s24 }
   0xc   :  { %p144_p6 = por %p143_p5, %p142_p4 }
   0xe   :  { %p145_p7 = pnand %p144_p6, %p138_p3 }
  0x10   :  { %148 = shalt.err (!%p145_p7)
}
  0x11   :  { %s200_s25 = smov 128   ;;  %s201_s26 = smov 8  }
  0x12   :  { %24 = dma.hbm_to_vmem [thread:$0]  %s274_s0, 256, %s19_s16, [#allocation3], %s200_s25, %s200_s25, %s201_s26  }
  0x13   :  { %193 = dma.done.wait [#allocation3], 256  }
  0x14   :  { %194 = vsyncadd [#allocation3], 4294967040  ;;  %v32_v0 = vld [vmem:[%s275_s1] sm:$0x3]  ;;  %vm36_vm0 = vcmask 58368   ;;  %v51_v10 = vlaneseq  ;;  %s202_s0 = smov [#allocation6]  }
  0x15   :  { %v33_v1 = vld [vmem:[%s276_s2] sm:$0x3]  ;;  %s105_s1 = sshll.u32 %s202_s0, 4  ;;  %s106_s1 = int_to_ptr.vmem [resolvable:$true] %s105_s1 }
  0x16   :  { %vm34_vm1 = vcmp.gt.f32.partialorder %v33_v1, 0.5  ;;  %v52_v11 = vshrl.u32 %v51_v10, 7  ;;  %s149_s2 = scalar_lea.vmem %s106_s1, 32  ;;  %p154_p9 = scmp.lt.s32.totalorder %s106_s1, %s106_s1 }
  0x17   :  { %v35_v2 = vsel %vm34_vm1, %v32_v0, -1000.0  ;;  %p150_p8 = scmp.ne.s32.totalorder %s106_s1, %s149_s2  ;;  %p155_p10 = scmp.lt.s32.totalorder %s149_s2, %s149_s2 }
  0x18   :  { %v37_v3 = vsel %vm36_vm0, %v35_v2, -inf  ;;  %v53_v12 = vsub.s32 0, %v52_v11  ;;  %v60_v16 = vsub.s32 1, %v52_v11 }
  0x19   :  { %38 = vmax.xlane.f32.xlu0 %v37_v3  ;;  %p156_p11 = por %p155_p10, %p154_p9 }
  0x1b   :  { %p157_p12 = pnand %p156_p11, %p150_p8 }
  0xa6   :  { %v39_v4 = vpop.xlane.xlu0 %38 }
  0xa7   :  { %v40_v5 = vsub.f32 %v35_v2, %v39_v4 }
  0xa9   :  { %v41_v6 = vmul.f32 1.442695, %v40_v5 }
  0xab   :  { %123 = vpow2.f32 %v41_v6 }
  0xb5   :  { %v124_v7 = vpop.eup %123 }
  0xb6   :  { %v43_v8 = vsel %vm36_vm0, %v124_v7, 0.0 }
  0xb7   :  { %44 = vadd.xlane.f32.xlu0 %v43_v8 }
 0x144   :  { %v45_v9 = vpop.xlane.xlu0 %44 }
 0x145   :  { %125 = vrcp.f32 %v45_v9 }
 0x14f   :  { %v126_v13 = vpop.eup %125 }
 0x150   :  { %v47_v14 = vmul.f32 %v126_v13, %v124_v7 }
 0x152   :  { %v54_v15 = vrot.slane %v47_v14, %v53_v12  ;;  %48 = vst.msk [vmem:[#allocation6] sm:$0x3] %vm36_vm0, %v47_v14  ;;  %v61_v17 = vrot.slane %v47_v14, %v60_v16 }
 0x154   :  { %56 = vbcast.lane.b32.xlu1 %v54_v15, 256 }
 0x158   :  { %63 = vbcast.lane.b32.xlu1 %v61_v17, 256 }
 0x159   :  { %160 = shalt.err (!%p157_p12)
}
 0x15a   :  { %s161_s9 = scalar_lea.hbm %s278_s4, 32 }
 0x15b   :  { %p162_p13 = scmp.ne.s32.totalorder %s278_s4, %s161_s9  ;;  %p165_p0 = scmp.lt.u32.totalorder %s161_s9, %s278_s4 }
 0x15d   :  { %p167_p1 = pnand %p165_p0, %p162_p13 }
 0x15f   :  { %170 = shalt.err (!%p167_p1)
}
 0x160   :  { %108 = dma.vmem_to_hbm [thread:$0]  %s106_s1, 32, %s278_s4, [#allocation7]   ;;  %v49_v18 = vld [vmem:[#allocation2] sm:$0xff]  ;;  %vm67_vm2 = vcmask 261120   ;;  %v50_v21 = vld [vmem:[#allocation2 + $0x8] sm:$0xff]  ;;  %vm84_vm3 = vcmask 1041409  }
 0x161   :  { %s203_s4 = smov [#allocation5]   ;;  %vm87_vm4 = vcmask 254976  }
 0x162   :  { %s95_s16 = sshll.u32 %s203_s4, 4  ;;  %s96_s16 = int_to_ptr.vmem [resolvable:$true] %s95_s16 }
 0x163   :  { %s171_s17 = scalar_lea.vmem %s96_s16, 32  ;;  %p176_p3 = scmp.lt.s32.totalorder %s96_s16, %s96_s16 }
 0x164   :  { %p172_p2 = scmp.ne.s32.totalorder %s96_s16, %s171_s17  ;;  %p177_p4 = scmp.lt.s32.totalorder %s171_s17, %s171_s17 }
 0x166   :  { %p178_p5 = por %p177_p4, %p176_p3 }
 0x168   :  { %p179_p6 = pnand %p178_p5, %p172_p2 }
 0x1c6   :  { %v57_v19 = vpop.permute.xlu1 %56 }
 0x1c7   :  { %v65_v20 = vmul.f32 %v57_v19, %v49_v18 }
 0x1c9   :  { %v68_v22 = vsel %vm67_vm2, %v65_v20, 0.0 }
 0x1ca   :  { %v69_v23 = vrot.slane %v68_v22, 4  ;;  %v64_v24 = vpop.permute.xlu1 %63 }
 0x1cb   :  { %v66_v25 = vmul.f32 %v64_v24, %v50_v21 }
 0x1cc   :  { %v70_v26 = vadd.f32 %v69_v23, %v68_v22 }
 0x1cd   :  { %v75_v27 = vsel %vm67_vm2, %v66_v25, 0.0 }
 0x1ce   :  { %v71_v28 = vrot.slane %v70_v26, 2  ;;  %v76_v29 = vrot.slane %v75_v27, 4 }
 0x1d0   :  { %v72_v30 = vadd.f32 %v71_v28, %v70_v26  ;;  %v77_v31 = vadd.f32 %v76_v29, %v75_v27 }
 0x1d2   :  { %v78_v32 = vrot.slane %v77_v31, 2  ;;  %v73_v33 = vrot.slane %v72_v30, 1 }
 0x1d4   :  { %v79_v34 = vadd.f32 %v78_v32, %v77_v31  ;;  %v74_v36 = vadd.f32 %v73_v33, %v72_v30 }
 0x1d6   :  { %v80_v35 = vrot.slane %v79_v34, 1 }
 0x1d8   :  { %v81_v37 = vadd.f32 %v80_v35, %v79_v34 }
 0x1da   :  { %v85_v38 = vsel %vm84_vm3, %v81_v37, %v74_v36 }
 0x1db   :  { %88 = vst.msk [vmem:[#allocation5] sm:$0x3] %vm87_vm4, %v85_v38 }
 0x1dc   :  { %182 = shalt.err (!%p179_p6)
}
 0x1dd   :  { %s183_s20 = scalar_lea.hbm %s277_s3, 32 }
 0x1de   :  { %p184_p7 = scmp.ne.s32.totalorder %s277_s3, %s183_s20  ;;  %p187_p8 = scmp.lt.u32.totalorder %s183_s20, %s277_s3 }
 0x1e0   :  { %p189_p9 = pnand %p187_p8, %p184_p7 }
 0x1e2   :  { %192 = shalt.err (!%p189_p9)
}
 0x1e3   :  { %98 = dma.vmem_to_hbm [thread:$0]  %s96_s16, 32, %s277_s3, [#allocation4]  }
 0x1e4   :  { %195 = dma.done.wait [#allocation4], 32  }
 0x1e5   :  { %196 = vsyncadd [#allocation4], 4294967264 }
 0x1e6   :  { %197 = dma.done.wait [#allocation7], 32  }
 0x1e7   :  { %198 = vsyncadd [#allocation7], 4294967264 }
 0x1e8   :  { %115 = vsyncpa [#allocation3], 1 }
 0x1e9   :  { %116 = vsyncpa [#allocation4], 1 }
 0x1ea   :  { %117 = vsyncpa [#allocation7], 1 }

</bundles_post_ra>
